<compile_context>
chip_gen: v6e
topology: v6e:2x2x1
jax: 0.10.0
libtpu: 0.0.40
codegen_flags: <defaults>
</compile_context>

<pallas_src>
import functools

import jax
import jax.numpy as jnp
from jax.experimental import pallas as pl
from jax.experimental.pallas import tpu as pltpu


# ------------------------------ helpers ----------------------------------- #
def _cdiv(a: int, b: int) -> int:
    return -(-a // b)


def _round_up(a: int, b: int) -> int:
    return _cdiv(a, b) * b


def _pick_tile_m(M: int, W: int, C: int, itemsize: int,
                 vmem_budget_bytes: int = 12 * 1024 * 1024) -> int:
    """Largest row-tile whose double-buffered footprint fits the budget.

    VMEM footprints use lane-padded minor dims (minor dims < 128 are padded
    to 128 lanes in VMEM), so the narrow weight / output blocks are not
    under-counted.  A 12 MiB budget keeps us comfortably under the scoped
    VMEM defaults on v5e (16 MiB), v6e (32 MiB) and v7x (32 of 64 MiB).
    """
    data_row = _round_up(W * C, 128) * itemsize      # (tm, W*C) block
    out_row = _round_up(C, 128) * itemsize           # (tm, C)   block
    w_row = _round_up(W, 128) * 4                    # (tm, W)   f32 block
    per_row = 2 * (data_row + out_row + w_row)       # double-buffered
    t = max(8, min(int(vmem_budget_bytes // max(per_row, 1)), 2048))
    # Keep at least 2 grid steps (when there is enough work) so the two
    # TensorCores on v7x can both stream; even out the step sizes so the
    # grid padding stays small.
    steps = max(_cdiv(M, t), 2 if M > 8 else 1)
    t = _round_up(_cdiv(M, steps), 8)
    return max(8, t)


# ----------------------------- Pallas kernel ------------------------------ #
def _rt_weighted_sum_kernel(x_ref, w_ref, o_ref, *, W: int, C: int):
    # x_ref: (tm, W*C)  lane-dense data      (window positions concatenated)
    # w_ref: (tm, W)    per-position weights (keep / count; NaN iff all masked)
    # o_ref: (tm, C)    relay tokens
    x = x_ref[...].astype(jnp.float32)
    w = w_ref[...].astype(jnp.float32)
    acc = w[:, 0:1] * x[:, 0:C]
    for p in range(1, W):                      # W is small & static: unrolled
        acc = acc + w[:, p:p + 1] * x[:, p * C:(p + 1) * C]
    o_ref[...] = acc.astype(o_ref.dtype)


def _weighted_window_mean(x2d, weights, C: int, *, tile_m: int):
    """x2d: (Mp, W*C), weights: (Mp, W) f32.  Returns (Mp, C)."""
    Mp, WC = x2d.shape
    W = weights.shape[1]
    assert Mp % tile_m == 0

    itemsize = x2d.dtype.itemsize
    flops = int(2 * Mp * W * C)
    bytes_accessed = int(Mp * WC * itemsize          # data read
                         + Mp * W * 4                # weights read
                         + Mp * C * itemsize)        # output write

    kernel = functools.partial(_rt_weighted_sum_kernel, W=W, C=C)
    return pl.pallas_call(
        kernel,
        out_shape=jax.ShapeDtypeStruct((Mp, C), x2d.dtype),
        grid_spec=pltpu.PrefetchScalarGridSpec(
            num_scalar_prefetch=0,
            grid=(Mp // tile_m,),
            in_specs=[
                pl.BlockSpec((tile_m, WC), lambda i: (i, 0)),
                pl.BlockSpec((tile_m, W), lambda i: (i, 0)),
            ],
            out_specs=pl.BlockSpec((tile_m, C), lambda i: (i, 0)),
        ),
        compiler_params=pltpu.CompilerParams(
            dimension_semantics=("parallel",),
            vmem_limit_bytes=32 * 1024 * 1024,
        ),
        cost_estimate=pl.CostEstimate(
            flops=flops, transcendentals=0, bytes_accessed=bytes_accessed),
    )(x2d, weights)


# ----------------------------- Module wrapper ------------------------------ #
class RelayTokenInitialiser:
    """JAX/Pallas port of the PyTorch RelayTokenInitialiser (use_cpe=False)."""

    def __init__(self, dim: int, patch_size: int, nempty: bool = False,
                 conv_norm: str = "batchnorm", rt_size: int = 1,
                 use_cpe: bool = False, xcpe: bool = False):
        assert patch_size % rt_size == 0, \
            "patch_size must be divisible by rt_size"
        self.dim = dim
        self.patch_size = patch_size
        self.rt_size = rt_size
        self.use_cpe = use_cpe
        # TODO(synk): CPE/xCPE (octree depthwise-conv positional encoding) has
        # no standalone Pallas equivalent without the octree neighbourhood
        # structure; only the use_cpe=False path is implemented.

    def __call__(self, data, rt_init_mask=None):
        """data: (N, C).  rt_init_mask: optional (M, W) bool, True = exclude.

        If rt_init_mask is None a mask excluding only padded tokens is built
        (mirrors octree.rt_init_mask[depth] for the synthetic case)."""
        K, C, G = self.patch_size, self.dim, self.rt_size
        W = K // G
        N = data.shape[0]
        assert data.shape[1] == C

        # ---- patch_partition + grid padding in a single pad --------------
        M = _round_up(N, K) // W                       # number of real windows
        tile_m = _pick_tile_m(M, W, C, data.dtype.itemsize)
        Mp = _round_up(M, tile_m)
        Np = Mp * W
        padded = jnp.pad(data, ((0, Np - N), (0, 0)))  # one HBM copy, like torch
        x2d = padded.reshape(Mp, W * C)                # lane-dense, zero-copy

        # ---- mask -> per-position weights (masked mean == weighted sum) ---
        if rt_init_mask is None:
            idx = jnp.arange(Np, dtype=jnp.int32).reshape(Mp, W)
            mask = idx >= N                            # padded tokens excluded
        else:
            m = rt_init_mask.astype(bool)
            assert m.shape == (M, W), (m.shape, (M, W))
            mask = jnp.pad(m, ((0, Mp - M), (0, 0)),
                           constant_values=True)       # grid-pad rows: all masked
        keep = (~mask).astype(jnp.float32)             # (Mp, W)
        cnt = jnp.sum(keep, axis=1, keepdims=True)
        # NaN (cnt == 0) only for fully-masked windows: torch-nanmean parity
        # for real windows; grid-padding windows are sliced off below.
        weights = keep / cnt

        out = _weighted_window_mean(x2d, weights, C, tile_m=tile_m)
        return out[:M]


# ----------------------------- Reference (JAX) ----------------------------- #
def _reference(data, K, G, rt_init_mask=None):
    N, C = data.shape
    W = K // G
    Np = _round_up(N, K)
    padded = jnp.pad(data, ((0, Np - N), (0, 0)))
    M = Np // W
    xw = padded.reshape(M, W, C).astype(jnp.float32)
    if rt_init_mask is None:
        idx = jnp.arange(Np).reshape(M, W)
        keep = (idx < N)
    else:
        keep = ~rt_init_mask.astype(bool)
    keepf = keep.astype(jnp.float32)[:, :, None]
    return (jnp.sum(xw * keepf, axis=1) /
            jnp.sum(keepf, axis=1)).astype(data.dtype)


# --------------------------------- Main ------------------------------------ #
if __name__ == "__main__":
    key = jax.random.PRNGKey(0)

    def _check(out, ref):
        assert out.shape == ref.shape, (out.shape, ref.shape)
        assert not bool(jnp.any(jnp.isnan(out)))
        assert bool(jnp.allclose(out, ref, atol=1e-5, rtol=1e-5))

    # 1) small C (< 128 lanes), rt_size=1, token count not a multiple of K
    key, k1 = jax.random.split(key)
    data1 = jax.random.normal(k1, (124, 32), dtype=jnp.float32)
    mod1 = RelayTokenInitialiser(dim=32, patch_size=8, rt_size=1)
    out1 = jax.block_until_ready(mod1(data1))
    _check(out1, _reference(data1, 8, 1))

    # 2) lane-aligned C (vreg-column aligned slices), rt_size > 1 (W = 8)
    key, k2 = jax.random.split(key)
    data2 = jax.random.normal(k2, (254, 128), dtype=jnp.float32)
    mod2 = RelayTokenInitialiser(dim=128, patch_size=16, rt_size=2)
    out2 = jax.block_until_ready(mod2(data2))
    _check(out2, _reference(data2, 16, 2))

    # 3) explicit rt_init_mask (true masked mean), every window keeps >=1 token
    key, k3, k4 = jax.random.split(key, 3)
    N3, K3, G3, C3 = 128, 8, 1, 32
    W3 = K3 // G3
    M3 = _round_up(N3, K3) // W3
    data3 = jax.random.normal(k3, (N3, C3), dtype=jnp.float32)
    m3 = jax.random.bernoulli(k4, 0.3, (M3, W3))
    m3 = m3.at[:, 0].set(False)                     # guarantee no all-NaN window
    mod3 = RelayTokenInitialiser(dim=C3, patch_size=K3, rt_size=G3)
    out3 = jax.block_until_ready(mod3(data3, rt_init_mask=m3))
    _check(out3, _reference(data3, K3, G3, rt_init_mask=m3))

    print("KERNEL_OK")
</pallas_src>

<mosaic_0001>
module attributes {stable_mosaic.version = 11 : i64} {
  func.func @_rt_weighted_sum_kernel(%arg0: i32, %arg1: memref<8x256xf32, #tpu.memory_space<vmem>>, %arg2: memref<8x8xf32, #tpu.memory_space<vmem>>, %arg3: memref<8x32xf32, #tpu.memory_space<vmem>>) attributes {dimension_semantics = [#tpu.dimension_semantics<parallel>], iteration_bounds = array<i64: 2>, scalar_prefetch = 0 : i64, scratch_operands = 0 : i64, tpu.core_type = #tpu.core_type<tc>, window_params = [{transform_indices = @transform_0, window_bounds = array<i64: 8, 256>}, {transform_indices = @transform_1, window_bounds = array<i64: 8, 8>}, {transform_indices = @transform_2, window_bounds = array<i64: 8, 32>}]} {
    %c0 = arith.constant 0 : index
    %c0_0 = arith.constant 0 : index
    %0 = vector.load %arg1[%c0, %c0_0] : memref<8x256xf32, #tpu.memory_space<vmem>>, vector<8x256xf32>
    %c0_1 = arith.constant 0 : index
    %c0_2 = arith.constant 0 : index
    %1 = vector.load %arg2[%c0_1, %c0_2] : memref<8x8xf32, #tpu.memory_space<vmem>>, vector<8x8xf32>
    %2 = vector.extract_strided_slice %1 {offsets = [0, 0], sizes = [8, 1], strides = [1, 1]} : vector<8x8xf32> to vector<8x1xf32>
    %3 = vector.extract_strided_slice %0 {offsets = [0, 0], sizes = [8, 32], strides = [1, 1]} : vector<8x256xf32> to vector<8x32xf32>
    %4 = vector.broadcast %2 : vector<8x1xf32> to vector<8x32xf32>
    %5 = arith.mulf %4, %3 : vector<8x32xf32>
    %6 = vector.extract_strided_slice %1 {offsets = [0, 1], sizes = [8, 1], strides = [1, 1]} : vector<8x8xf32> to vector<8x1xf32>
    %7 = vector.extract_strided_slice %0 {offsets = [0, 32], sizes = [8, 32], strides = [1, 1]} : vector<8x256xf32> to vector<8x32xf32>
    %8 = vector.broadcast %6 : vector<8x1xf32> to vector<8x32xf32>
    %9 = arith.mulf %8, %7 : vector<8x32xf32>
    %10 = arith.addf %5, %9 : vector<8x32xf32>
    %11 = vector.extract_strided_slice %1 {offsets = [0, 2], sizes = [8, 1], strides = [1, 1]} : vector<8x8xf32> to vector<8x1xf32>
    %12 = vector.extract_strided_slice %0 {offsets = [0, 64], sizes = [8, 32], strides = [1, 1]} : vector<8x256xf32> to vector<8x32xf32>
    %13 = vector.broadcast %11 : vector<8x1xf32> to vector<8x32xf32>
    %14 = arith.mulf %13, %12 : vector<8x32xf32>
    %15 = arith.addf %10, %14 : vector<8x32xf32>
    %16 = vector.extract_strided_slice %1 {offsets = [0, 3], sizes = [8, 1], strides = [1, 1]} : vector<8x8xf32> to vector<8x1xf32>
    %17 = vector.extract_strided_slice %0 {offsets = [0, 96], sizes = [8, 32], strides = [1, 1]} : vector<8x256xf32> to vector<8x32xf32>
    %18 = vector.broadcast %16 : vector<8x1xf32> to vector<8x32xf32>
    %19 = arith.mulf %18, %17 : vector<8x32xf32>
    %20 = arith.addf %15, %19 : vector<8x32xf32>
    %21 = vector.extract_strided_slice %1 {offsets = [0, 4], sizes = [8, 1], strides = [1, 1]} : vector<8x8xf32> to vector<8x1xf32>
    %22 = vector.extract_strided_slice %0 {offsets = [0, 128], sizes = [8, 32], strides = [1, 1]} : vector<8x256xf32> to vector<8x32xf32>
    %23 = vector.broadcast %21 : vector<8x1xf32> to vector<8x32xf32>
    %24 = arith.mulf %23, %22 : vector<8x32xf32>
    %25 = arith.addf %20, %24 : vector<8x32xf32>
    %26 = vector.extract_strided_slice %1 {offsets = [0, 5], sizes = [8, 1], strides = [1, 1]} : vector<8x8xf32> to vector<8x1xf32>
    %27 = vector.extract_strided_slice %0 {offsets = [0, 160], sizes = [8, 32], strides = [1, 1]} : vector<8x256xf32> to vector<8x32xf32>
    %28 = vector.broadcast %26 : vector<8x1xf32> to vector<8x32xf32>
    %29 = arith.mulf %28, %27 : vector<8x32xf32>
    %30 = arith.addf %25, %29 : vector<8x32xf32>
    %31 = vector.extract_strided_slice %1 {offsets = [0, 6], sizes = [8, 1], strides = [1, 1]} : vector<8x8xf32> to vector<8x1xf32>
    %32 = vector.extract_strided_slice %0 {offsets = [0, 192], sizes = [8, 32], strides = [1, 1]} : vector<8x256xf32> to vector<8x32xf32>
    %33 = vector.broadcast %31 : vector<8x1xf32> to vector<8x32xf32>
    %34 = arith.mulf %33, %32 : vector<8x32xf32>
    %35 = arith.addf %30, %34 : vector<8x32xf32>
    %36 = vector.extract_strided_slice %1 {offsets = [0, 7], sizes = [8, 1], strides = [1, 1]} : vector<8x8xf32> to vector<8x1xf32>
    %37 = vector.extract_strided_slice %0 {offsets = [0, 224], sizes = [8, 32], strides = [1, 1]} : vector<8x256xf32> to vector<8x32xf32>
    %38 = vector.broadcast %36 : vector<8x1xf32> to vector<8x32xf32>
    %39 = arith.mulf %38, %37 : vector<8x32xf32>
    %40 = arith.addf %35, %39 : vector<8x32xf32>
    %c0_3 = arith.constant 0 : index
    %c0_4 = arith.constant 0 : index
    %41 = vector.load %arg3[%c0_3, %c0_4] : memref<8x32xf32, #tpu.memory_space<vmem>>, vector<8x32xf32>
    tpu.vector_store %arg3[%c0_3, %c0_4], %40 {strides = array<i32>} : memref<8x32xf32, #tpu.memory_space<vmem>>, vector<8x32xf32>,
    return
  }
  func.func @transform_0(%arg0: i32) -> (i32, i32) {
    %c0_i32 = arith.constant 0 : i32
    %c0_i32_0 = arith.constant 0 : i32
    return %arg0, %c0_i32 : i32, i32
  }
  func.func @transform_1(%arg0: i32) -> (i32, i32) {
    %c0_i32 = arith.constant 0 : i32
    %c0_i32_0 = arith.constant 0 : i32
    return %arg0, %c0_i32 : i32, i32
  }
  func.func @transform_2(%arg0: i32) -> (i32, i32) {
    %c0_i32 = arith.constant 0 : i32
    %c0_i32_0 = arith.constant 0 : i32
    return %arg0, %c0_i32 : i32, i32
  }
}

</mosaic_0001>

<bundles_post_ra>
// kernel: tpu_custom_call.1
= control target key start
LH: loop header
LB: loop body
LE: loop exit
PB: predicated region body
PF: predicated region fallthrough
CT: control target
= control target key end

     0   :  { %7 = vsyncpa [#allocation3], 0  ;;  %s703_s0 = inlined_call_operand.hbm [shape: f32[16,256], index: 0, kind: input, shape index: {}]   ;;  %s704_s1 = inlined_call_operand.vmem [shape: f32[16,8], index: 1, kind: input, shape index: {}]   ;;  %s705_s2 = inlined_call_operand.hbm [shape: f32[16,32], index: 2, kind: output, shape index: {}]  }
   0x1   :  { %9 = vsyncpa [#allocation3 + $0x1], 0 }
   0x2   :  { %10 = vsyncpa [#allocation4], 0 }
   0x3   :  { %12 = vsyncpa [#allocation4 + $0x1], 0  ;;  %s552_s9 = smov 0   ;;  %s554_s10 = smov 0  }
   0x4   :  { %s556_s11 = smov 0   ;;  %s558_s12 = smov 0  }
   0x5 LB: > { %s573_s13 = sadd.s32 4294967295, %s522_s12   ;;  %s350_s14 = sadd.s32 4294967294, %s522_s12   ;;  %s522_s12 = sphi %s558_s12, %s722_s12   ;;  %s518_s11 = sphi %s556_s11, %s721_s11   ;;  %s514_s10 = sphi %s554_s10, %s720_s10   ;;  %s510_s9 = sphi %s552_s9, %s719_s9  }
   0x6   : > { %s577_s15 = sadd.s32 1, %s522_s12   ;;  %s25_s16 = sadd.s32 1, %s518_s11 }
   0x7   : > { %s22_s17 = ssub.s32 %s522_s12, %s577_s15  ;;  %p32_p0 = scmp.ne.s32.totalorder %s518_s11, %s514_s10 }
   0x8   : > { %p23_p1 = scmp.eq.s32.totalorder %s22_s17, 0  ;;  %p33_p2 = scmp.eq.s32.totalorder %s522_s12, 0 }
   0x9   : > { %p38_p3 = scmp.ne.s32.totalorder %s514_s10, %s510_s9  ;;  %p39_p4 = scmp.eq.s32.totalorder %s573_s13, 0 }
   0xa   : > { %s589_s18 = scalar_select %p23_p1, %s518_s11, %s25_s16  }
   0xb   : > { %p591_p5 = por %p33_p2, %p32_p0  ;;  %p595_p6 = por %p39_p4, %p38_p3 }
   0xc   : > { %p88_p7 = scmp.eq.s32.totalorder %s573_s13, 1  ;;  %p94_p8 = scmp.eq.s32.totalorder %s350_s14, 1 }
   0xd   : > { %s709_s20 = scalar_select %p595_p6, 1, 0 }
   0xe   : > { %p377_p10 = scmp.lt.s32.totalorder %s522_s12, 2  ;;  %p602_p11 = por %p88_p7, %p32_p0 }
   0xf   : > { %p606_p12 = por %p94_p8, %p38_p3  ;;  %s114_s23 = sand.u32 1, %s518_s11  }
  0x10   : > { %s710_s21 = scalar_select %p602_p11, 1, 0 }
  0x11   : > { %s711_s22 = scalar_select %p606_p12, 1, 0 }
  0x12   : > { %s364_s24 = sshll.u32 %s522_s12, 8  ;;  %s353_s25 = sshll.u32 %s114_s23, 4 }
  0x13   : > { %s615_s28 = scalar_lea.hbm %s703_s0, %s364_s24  ;;  %s118_s29 = scalar_lea.vmem [#allocation2], %s353_s25 }
  0x14   : > { %s126_s30 = sshll.u32 %s118_s29, 4  ;;  %p619_p13 = pnand %p377_p10, %p591_p5  ;;  %s623_s30 = int_to_ptr.vmem [resolvable:$true] %s126_s30 }
  0x15   : > { %s115_s4 = scalar_lea.sflag [#allocation3], %s114_s23  ;;  %s430_s5 = scalar_lea.hbm %s615_s28, 256 }
  0x16   : > { %p431_p2 = scmp.ne.s32.totalorder %s615_s28, %s430_s5  ;;  %p432_p3 = pneg %p619_p13 }
  0x17   : > { %s435_s8 = scalar_lea.hbm %s703_s0, 512  ;;  %p436_p5 = scmp.lt.s32.totalorder %s615_s28, %s703_s0 }
  0x18   : > { %p433_p4 = pnand %p432_p3, %p431_p2  ;;  %p437_p8 = scmp.lt.s32.totalorder %s435_s8, %s430_s5 }
  0x1a   : > { %p434_p7 = pneg %p433_p4  ;;  %p438_p10 = por %p437_p8, %p436_p5 }
  0x1c   : > { %p439_p9 = pnand %p438_p10, %p434_p7 }
  0x1e   : > { %442 = shalt.err (!%p439_p9)
}
  0x1f   : > { %s443_s17 = scalar_lea.vmem %s623_s30, 256  ;;  %s524_s19 = smov [#allocation2]  }
  0x20   : > { %p444_p0 = scmp.ne.s32.totalorder %s623_s30, %s443_s17  ;;  %s448_s23 = sshll.u32 %s524_s19, 4  ;;  %s449_s23 = int_to_ptr.vmem [resolvable:$false] %s448_s23 }
  0x21   : > { %s450_s24 = scalar_lea.vmem %s449_s23, 512  ;;  %p451_p4 = scmp.lt.s32.totalorder %s623_s30, %s449_s23 }
  0x22   : > { %p446_p1 = pnand %p444_p0, %p432_p3  ;;  %p452_p12 = scmp.lt.s32.totalorder %s450_s24, %s443_s17 }
  0x24   : > { %p447_p2 = pneg %p446_p1  ;;  %p453_p11 = por %p452_p12, %p451_p4 }
  0x26   : > { %p454_p6 = pnand %p453_p11, %p447_p2 }
  0x28   : > { %457 = shalt.err (!%p454_p6)
}
  0x29   : > { %372 = dma.hbm_to_vmem [thread:$0]  (!%p619_p13), %s615_s28, 256, %s623_s30, %s115_s4  }
  0x2a   : > { %p713_p9 = scmp.lt.s32.totalorder %s522_s12, 3  ;;  %p714_p7 = scmp.ge.s32.totalorder %s522_s12, 1 }
  0x2c   : > { %p139_p0 = pnand %p714_p7, %p713_p9 }
  0x2d   : > { %s650_s25 = sand.u32 (!%p139_p0), 1, %s514_s10   ;;  %p715_p6 = scmp.ne.s32.totalorder (!%p139_p0), %s709_s20, 0 }
  0x2e   : > { %142 = sbr.rel (%p139_p0) target bundleno = 330 (0x14a), region = 28  ;;  %s357_s26 = sshll.u32 (!%p139_p0), %s650_s25, 4 }
  0x2f   : > { %s145_s27 = scalar_lea.sflag (!%p139_p0), [#allocation3], %s650_s25  ;;  %s654_s29 = scalar_lea.vmem (!%p139_p0), [#allocation2], %s357_s26 }
  0x33   : > { %501 = dma.done.wait (%p715_p6), %s145_s27, 256  }
  0x34   : > { %503 = vsyncadd (%p715_p6), %s145_s27, 4294967040  ;;  %p173_p11 = scmp.lt.s32.totalorder %s573_s13, 1  ;;  %v525_v0 = vmov 1   ;;  %v526_v1 = vmov 3   ;;  %v527_v3 = vmov 2   ;;  %v528_v4 = vmov 5  }
  0x35   : > { %422 = vset.pattern.permute.xlu0 %v525_v0  ;;  %424 = vset.pattern.permute.xlu1 %v526_v1  ;;  %v529_v5 = vmov 6   ;;  %v530_v6 = vmov 7   ;;  %v531_v7 = vmov 0   ;;  %v532_v8 = vmov 4   ;;  %v177_v9 = vld [vmem:[%s654_s29] sm:$0xff]  ;;  %s533_s20 = smov 96  }
  0x36   : > { %s174_s28 = scalar_select %p173_p11, %s573_s13, 1  ;;  %v178_v16 = vld [vmem:[%s654_s29 + $0x8] sm:$0xff]  ;;  %vm252_vm0 = vcmask 261120  }
  0x37   : > { %s534_s6 = smov 32   ;;  %s535_s7 = smov 64  }
  0x38   : > { %s359_s30 = sshll.u32 %s174_s28, 3  ;;  %s358_s8 = sshll.u32 %s650_s25, 3 }
  0x39   : > { %s176_s5 = scalar_lea.vmem %s704_s1, %s359_s30  ;;  %s361_s14 = sshll.u32 %s573_s13, 7 }
  0x3a   : > { %v179_v2 = vld [vmem:[%s176_s5] sm:$0xff]  ;;  %s172_s16 = scalar_lea.vmem [#allocation5], %s358_s8  ;;  %s266_s24 = scalar_lea.hbm %s705_s2, %s361_s14 }
  0x3b   : > { %187 = vperm.xlu0 %422, %v179_v2   ;;  %207 = vperm.xlu1 %424, %v179_v2   ;;  %s268_s17 = sshll.u32 %s172_s16, 4  ;;  %s255_s26 = scalar_lea.sflag [#allocation4], %s650_s25  ;;  %s269_s17 = int_to_ptr.vmem [resolvable:$true] %s268_s17 }
  0x3c   : > { %s458_s27 = scalar_lea.vmem %s269_s17, 128  ;;  %p716_p13 = scmp.ne.s32.totalorder %s710_s21, 0 }
  0x3d   : > { %p459_p12 = scmp.ne.s32.totalorder %s269_s17, %s458_s27  ;;  %s536_s29 = smov [#allocation5]  }
  0x3e   : > { %s462_s28 = sshll.u32 %s536_s29, 4  ;;  %s463_s28 = int_to_ptr.vmem [resolvable:$false] %s462_s28 }
  0x3f   : > { %423 = vset.pattern.permute.xlu0 %v527_v3  ;;  %425 = vset.pattern.permute.xlu1 %v528_v4  ;;  %p460_p1 = pnand %p459_p12, %p716_p13  ;;  %s464_s13 = scalar_lea.vmem %s463_s28, 256 }
  0x40   : > { %197 = vperm.xlu0 %423, %v179_v2   ;;  %223 = vperm.xlu1 %425, %v179_v2   ;;  %p465_p5 = scmp.lt.s32.totalorder %s269_s17, %s463_s28  ;;  %p466_p8 = scmp.lt.s32.totalorder %s464_s13, %s458_s27 }
  0x41   : > { %p461_p3 = pneg %p460_p1 }
  0x42   : > { %p467_p10 = por %p466_p8, %p465_p5 }
  0x44   : > { %426 = vset.pattern.permute.xlu1 %v529_v5  ;;  %427 = vset.pattern.permute.xlu0 %v530_v6  ;;  %p468_p2 = pnand %p467_p10, %p461_p3 }
  0x45   : > { %233 = vperm.xlu1 %426, %v179_v2   ;;  %243 = vperm.xlu0 %427, %v179_v2  }
  0x49   : > { %428 = vset.pattern.permute.xlu1 %v531_v7 }
  0x4a   : > { %182 = vperm.xlu1 %428, %v179_v2  }
  0x4e   : > { %429 = vset.pattern.permute.xlu1 %v532_v8 }
  0x4f   : > { %217 = vperm.xlu1 %429, %v179_v2  }
  0xb6   : > { %v188_v10 = vpop.permute.xlu0 %187  ;;  %v208_v11 = vpop.permute.xlu1 %207 }
  0xb7   : > { %v190_v12 = vmul.f32 %v188_v10, %v177_v9  ;;  %v210_v13 = vmul.f32 %v208_v11, %v177_v9 }
  0xb9   : > { %192 = vrot.lane.b32.xlu0 %v190_v12, %s533_s20 }
  0xbb   : > { %v198_v14 = vpop.permute.xlu0 %197  ;;  %v224_v15 = vpop.permute.xlu1 %223 }
  0xbc   : > { %v200_v17 = vmul.f32 %v198_v14, %v177_v9  ;;  %v226_v18 = vmul.f32 %v224_v15, %v178_v16 }
  0xbd   : > { %212 = vrot.lane.b32.xlu0 %v210_v13, %s534_s6 }
  0xbe   : > { %202 = vrot.lane.b32.xlu1 %v200_v17, %s535_s7 }
  0xc0   : > { %v234_v19 = vpop.permute.xlu1 %233  ;;  %v244_v20 = vpop.permute.xlu0 %243 }
  0xc1   : > { %v236_v21 = vmul.f32 %v234_v19, %v178_v16  ;;  %v246_v22 = vmul.f32 %v244_v20, %v178_v16 }
  0xc2   : > { %228 = vrot.lane.b32.xlu1 %v226_v18, %s533_s20 }
  0xc3   : > { %238 = vrot.lane.b32.xlu0 %v236_v21, %s535_s7 }
  0xc5   : > { %v183_v23 = vpop.permute.xlu1 %182 }
  0xc6   : > { %248 = vrot.lane.b32.xlu1 %v246_v22, %s534_s6  ;;  %v185_v26 = vmul.f32 %v183_v23, %v177_v9 }
  0xca   : > { %v218_v24 = vpop.permute.xlu1 %217 }
  0xcb   : > { %v220_v31 = vmul.f32 %v218_v24, %v178_v16 }
 0x12b   : > { %v193_v25 = vpop.permute.xlu0 %192 }
 0x12c   : > { %v195_v27 = vadd.f32 %v193_v25, %v185_v26 }
 0x12f   : > { %v213_v30 = vpop.permute.xlu0 %212 }
 0x130   : > { %v203_v28 = vpop.permute.xlu1 %202 }
 0x131   : > { %v205_v29 = vadd.f32 %v203_v28, %v195_v27 }
 0x133   : > { %v215_v32 = vadd.f32 %v213_v30, %v205_v29 }
 0x134   : > { %v229_v33 = vpop.permute.xlu1 %228 }
 0x135   : > { %v221_v34 = vadd.f32 %v220_v31, %v215_v32  ;;  %v239_v35 = vpop.permute.xlu0 %238 }
 0x137   : > { %v231_v36 = vadd.f32 %v229_v33, %v221_v34 }
 0x138   : > { %v249_v37 = vpop.permute.xlu1 %248 }
 0x139   : > { %v241_v38 = vadd.f32 %v239_v35, %v231_v36 }
 0x13b   : > { %v251_v39 = vadd.f32 %v249_v37, %v241_v38 }
 0x13d   : > { %253 = vst.msk [vmem:[%s172_s16] sm:$0xff] %vm252_vm0, %v251_v39 }
 0x13e   : > { %471 = shalt.err (!%p468_p2)
}
 0x13f   : > { %s472_s30 = scalar_lea.hbm %s266_s24, 128  ;;  %s476_s4 = scalar_lea.hbm %s705_s2, 256 }
 0x140   : > { %p473_p4 = scmp.ne.s32.totalorder %s266_s24, %s472_s30  ;;  %p477_p0 = scmp.lt.s32.totalorder %s266_s24, %s705_s2 }
 0x141   : > { %p478_p6 = scmp.lt.s32.totalorder %s476_s4, %s472_s30 }
 0x142   : > { %p474_p9 = pnand %p473_p4, %p716_p13 }
 0x143   : > { %p479_p11 = por %p478_p6, %p477_p0 }
 0x144   : > { %p475_p7 = pneg %p474_p9 }
 0x146   : > { %p480_p12 = pnand %p479_p11, %p475_p7 }
 0x148   : > { %483 = shalt.err (!%p480_p12)
}
 0x149   : > { %367 = dma.vmem_to_hbm [thread:$0]  (%p716_p13), %s269_s17, 128, %s266_s24, %s255_s26  }
 0x14a PF: > { %s280_s6 = sand.u32 1, %s510_s9   ;;  %p717_p1 = scmp.ne.s32.totalorder %s711_s22, 0 }
 0x14b   : > { %p718_p3 = scmp.ge.s32.totalorder %s522_s12, 2  ;;  %s281_s7 = scalar_lea.sflag [#allocation4], %s280_s6 }
 0x14d   : > { %p374_p5 = pnand %p718_p3, %p717_p1 }
 0x14f   : > { %p375_p8 = pneg %p374_p5 }
 0x151   : > { %505 = dma.done.wait (%p375_p8), %s281_s7, 128  }
 0x152   : > { %507 = vsyncadd (%p375_p8), %s281_s7, 4294967168  ;;  %p15_p10 = scmp.ge.s32.totalorder %s577_s15, 4   ;;  %s719_s9 = smov %s514_s10 }
 0x153   : > { %s720_s10 = smov %s518_s11  ;;  %s721_s11 = smov %s589_s18 }
 0x154   : > { %s722_s12 = smov %s577_s15  ;;  %17 = sbr.rel (!%p15_p10) target bundleno = 5 (0x5), region = 76 }
 0x159   :  { %286 = vsyncpa [#allocation3], 1 }
 0x15a   :  { %288 = vsyncpa [#allocation3 + $0x1], 1 }
 0x15b   :  { %289 = vsyncpa [#allocation4], 1 }
 0x15c   :  { %291 = vsyncpa [#allocation4 + $0x1], 1 }

</bundles_post_ra>
